<compile_context>
chip_gen: v5e
topology: v5e:2x2
jax: 0.10.0
libtpu: 0.0.40
codegen_flags: <defaults>
</compile_context>

<pallas_src>
import functools
import math

import jax
import jax.numpy as jnp
from jax.experimental import pallas as pl
from jax.experimental.pallas import tpu as pltpu

LN_EPS = 1e-5  # torch.nn.LayerNorm default


def _round_up(n, m):
    return ((n + m - 1) // m) * m


def _layernorm_f32(v, g, b):
    """LayerNorm over last dim, biased variance (matches torch.nn.LayerNorm)."""
    mean = jnp.mean(v, axis=-1, keepdims=True)
    vc = v - mean
    var = jnp.mean(vc * vc, axis=-1, keepdims=True)
    return vc * jax.lax.rsqrt(var + LN_EPS) * g + b


# ----------------------------------------------------------------------------
# Fused PreNormCross + single-head cross-attention (flash-style, online softmax)
#   out = softmax(LN(x) @ LN(ctx)^T / sqrt(D)) @ LN(ctx)
# ----------------------------------------------------------------------------
def _fused_prenorm_cross_attn_kernel(
        ln_ref,                          # (4, D) packed [g_x, b_x, g_c, b_c]
        q_ref, c_ref,                    # (tq, D), (tk, D) tiles
        o_ref,                           # (tq, D) output tile
        q_scr, m_scr, l_scr, acc_scr,    # cached LN(q), online-softmax state
        *, scale, nk_valid, tk):
    ki = pl.program_id(2)

    @pl.when(ki == 0)
    def _init():
        # LayerNorm the q tile once per (b, qi); fold 1/sqrt(D) into it
        # (tq*D multiplies instead of tq*tk on the score matrix).
        q_scr[...] = _layernorm_f32(
            q_ref[...].astype(jnp.float32),
            ln_ref[0:1, :].astype(jnp.float32),
            ln_ref[1:2, :].astype(jnp.float32)) * scale
        m_scr[...] = jnp.full_like(m_scr, -jnp.inf)
        l_scr[...] = jnp.zeros_like(l_scr)
        acc_scr[...] = jnp.zeros_like(acc_scr)

    # Fused LayerNorm of this context (K/V) tile -- never round-trips HBM.
    c = _layernorm_f32(c_ref[...].astype(jnp.float32),
                       ln_ref[2:3, :].astype(jnp.float32),
                       ln_ref[3:4, :].astype(jnp.float32))

    # Scores for this K block (MXU).
    s = jnp.dot(q_scr[...], c.T, preferred_element_type=jnp.float32)  # (tq, tk)

    # Mask K rows that only exist because of padding (static check -> the
    # where() is only emitted when Nk is ragged).
    if nk_valid % tk != 0:
        k_pos = ki * tk + jax.lax.broadcasted_iota(jnp.int32, s.shape, 1)
        s = jnp.where(k_pos < nk_valid, s, -jnp.inf)

    # Online softmax update.
    m_prev = m_scr[...]
    m_new = jnp.maximum(m_prev, jnp.max(s, axis=-1, keepdims=True))
    alpha = jnp.exp(m_prev - m_new)
    p = jnp.exp(s - m_new)
    l_scr[...] = alpha * l_scr[...] + jnp.sum(p, axis=-1, keepdims=True)
    # P·V matmul in the input dtype (bf16 inputs -> bf16 MXU), f32 accumulate.
    acc_scr[...] = alpha * acc_scr[...] + jnp.dot(
        p.astype(c_ref.dtype), c.astype(c_ref.dtype),
        preferred_element_type=jnp.float32)
    m_scr[...] = m_new

    @pl.when(ki == pl.num_programs(2) - 1)
    def _finalize():
        inv_l = pl.reciprocal(l_scr[...], approx=True)   # EUP slot, ~free
        # TODO(synk): for D < 128, a lane-dense output packing (two 64-wide
        # rows per 128-lane row) would avoid masked partial stores.
        o_ref[...] = (acc_scr[...] * inv_l).astype(o_ref.dtype)


def fused_pre_norm_cross_attention(x, context, gx, bx, gc, bc,
                                   *, tq=256, tk=256):
    """Fused LN(x), LN(context), softmax(LN(x) LN(ctx)^T / sqrt(D)) LN(ctx)."""
    B, Nq, D = x.shape
    Bc, Nk, Dc = context.shape
    assert B == Bc and D == Dc

    # Tile sizes: 256-aligned when the problem is big enough (MXU friendly),
    # otherwise the full (8-rounded) extent.  Pad ragged Nq/Nk; padded K rows
    # are masked inside the kernel, padded Q rows are sliced off.
    tq = min(tq, _round_up(Nq, 8))
    tk = min(tk, _round_up(Nk, 8))
    nq_p = _round_up(Nq, tq)
    nk_p = _round_up(Nk, tk)
    xp = x if nq_p == Nq else jnp.pad(x, ((0, 0), (0, nq_p - Nq), (0, 0)))
    cp = (context if nk_p == Nk
          else jnp.pad(context, ((0, 0), (0, nk_p - Nk), (0, 0))))

    # Pack the four LN affine vectors into one (4, D) resident block.
    ln_params = jnp.stack(
        [gx.astype(x.dtype), bx.astype(x.dtype),
         gc.astype(x.dtype), bc.astype(x.dtype)], axis=0)

    scale = 1.0 / math.sqrt(D)
    kernel = functools.partial(_fused_prenorm_cross_attn_kernel,
                               scale=scale, nk_valid=Nk, tk=tk)

    grid = (B, nq_p // tq, nk_p // tk)
    out = pl.pallas_call(
        kernel,
        out_shape=jax.ShapeDtypeStruct((B, nq_p, D), x.dtype),
        grid_spec=pltpu.PrefetchScalarGridSpec(
            num_scalar_prefetch=0,
            grid=grid,
            in_specs=[
                pl.BlockSpec((4, D), lambda b, qi, ki: (0, 0)),    # LN params
                pl.BlockSpec((None, tq, D), lambda b, qi, ki: (b, qi, 0)),
                pl.BlockSpec((None, tk, D), lambda b, qi, ki: (b, ki, 0)),
            ],
            out_specs=pl.BlockSpec((None, tq, D),
                                   lambda b, qi, ki: (b, qi, 0)),
            scratch_shapes=[
                pltpu.VMEM((tq, D), jnp.float32),   # cached LN(q) * scale
                pltpu.VMEM((tq, 1), jnp.float32),   # running max
                pltpu.VMEM((tq, 1), jnp.float32),   # running denom
                pltpu.VMEM((tq, D), jnp.float32),   # output accumulator
            ]),
        compiler_params=pltpu.CompilerParams(
            dimension_semantics=("parallel", "parallel", "arbitrary")),
    )(ln_params, xp, cp)

    return out[:, :Nq, :]


# ----------------------------------------------------------------------------
# Standalone LayerNorm kernel (used only for arbitrary user `fn` fallback).
# Large row tiles + padding path (no rows % tile assert).
# ----------------------------------------------------------------------------
def _layernorm_kernel(gb_ref, x_ref, o_ref):
    y = _layernorm_f32(x_ref[...].astype(jnp.float32),
                       gb_ref[0:1, :].astype(jnp.float32),
                       gb_ref[1:2, :].astype(jnp.float32))
    o_ref[...] = y.astype(o_ref.dtype)


def pallas_layernorm(x, gamma, beta, *, tile_rows=512):
    orig_shape = x.shape
    D = orig_shape[-1]
    rows = math.prod(orig_shape[:-1])
    x2 = x.reshape(rows, D)

    tile = min(tile_rows, _round_up(rows, 8))
    rows_p = _round_up(rows, tile)
    if rows_p != rows:
        x2 = jnp.pad(x2, ((0, rows_p - rows), (0, 0)))

    gb = jnp.stack([gamma.astype(x.dtype), beta.astype(x.dtype)], axis=0)

    out = pl.pallas_call(
        _layernorm_kernel,
        out_shape=jax.ShapeDtypeStruct((rows_p, D), x.dtype),
        grid_spec=pltpu.PrefetchScalarGridSpec(
            num_scalar_prefetch=0,
            grid=(rows_p // tile,),
            in_specs=[
                pl.BlockSpec((2, D), lambda i: (0, 0)),
                pl.BlockSpec((tile, D), lambda i: (i, 0)),
            ],
            out_specs=pl.BlockSpec((tile, D), lambda i: (i, 0))),
        compiler_params=pltpu.CompilerParams(
            dimension_semantics=("parallel",)),
    )(gb, x2)
    return out[:rows].reshape(orig_shape)


# ----------------------------------------------------------------------------
# PreNormCross wrapper
# ----------------------------------------------------------------------------
def pre_norm_cross(params, x, context, fn=None):
    """PreNormCross.forward.

    fn=None -> fast path: LayerNorms fused into the Pallas cross-attention.
    Otherwise -> Pallas LayerNorms followed by the user-supplied fn.
    """
    if fn is None:
        return fused_pre_norm_cross_attention(
            x, context,
            params["norm_g"], params["norm_b"],
            params["norm_ctx_g"], params["norm_ctx_b"])
    x_n = pallas_layernorm(x, params["norm_g"], params["norm_b"])
    c_n = pallas_layernorm(context, params["norm_ctx_g"], params["norm_ctx_b"])
    return fn(x_n, c_n)


def init_params(dim, dtype=jnp.float32):
    # nn.LayerNorm default init: weight = 1, bias = 0 (deterministic).
    return {
        "norm_g": jnp.ones((dim,), dtype),
        "norm_b": jnp.zeros((dim,), dtype),
        "norm_ctx_g": jnp.ones((dim,), dtype),
        "norm_ctx_b": jnp.zeros((dim,), dtype),
    }


if __name__ == "__main__":
    def ln_ref(v, g, b):
        m = jnp.mean(v, axis=-1, keepdims=True)
        va = jnp.mean((v - m) ** 2, axis=-1, keepdims=True)
        return (v - m) / jnp.sqrt(va + LN_EPS) * g + b

    def attn_ref(xn, cn):
        d = xn.shape[-1]
        s = jnp.einsum('bqd,bkd->bqk', xn, cn) / jnp.sqrt(d)
        p = jax.nn.softmax(s, axis=-1)
        return jnp.einsum('bqk,bkd->bqd', p, cn)

    key = jax.random.PRNGKey(0)

    # Case 1: aligned small shapes (fused fast path).
    B, Nq, Nk, D = 2, 8, 16, 64
    kx, kc = jax.random.split(key)
    x = jax.random.normal(kx, (B, Nq, D), dtype=jnp.float32)
    context = jax.random.normal(kc, (B, Nk, D), dtype=jnp.float32)
    params = init_params(D)

    out = jax.block_until_ready(pre_norm_cross(params, x, context))
    ref = attn_ref(ln_ref(x, params["norm_g"], params["norm_b"]),
                   ln_ref(context, params["norm_ctx_g"], params["norm_ctx_b"]))
    assert jnp.allclose(out, ref, atol=2e-2, rtol=2e-2), "fused path mismatch"

    # Case 2: ragged shapes exercising the padding + K-mask path.
    B2, Nq2, Nk2 = 2, 10, 20
    kx2, kc2 = jax.random.split(kc)
    x2 = jax.random.normal(kx2, (B2, Nq2, D), dtype=jnp.float32)
    c2 = jax.random.normal(kc2, (B2, Nk2, D), dtype=jnp.float32)
    out2 = jax.block_until_ready(pre_norm_cross(params, x2, c2))
    ref2 = attn_ref(ln_ref(x2, params["norm_g"], params["norm_b"]),
                    ln_ref(c2, params["norm_ctx_g"], params["norm_ctx_b"]))
    assert jnp.allclose(out2, ref2, atol=2e-2, rtol=2e-2), "ragged path mismatch"

    # Case 3: generic-fn fallback path (standalone Pallas LayerNorms).
    out3 = jax.block_until_ready(pre_norm_cross(params, x, context, fn=attn_ref))
    assert jnp.allclose(out3, ref, atol=2e-2, rtol=2e-2), "fallback path mismatch"

    print("KERNEL_OK")
</pallas_src>

<mosaic_0001>
module attributes {stable_mosaic.version = 11 : i64} {
  func.func @_fused_prenorm_cross_attn_kernel(%arg0: i32, %arg1: i32, %arg2: i32, %arg3: memref<4x64xf32, #tpu.memory_space<vmem>>, %arg4: memref<1x8x64xf32, #tpu.memory_space<vmem>>, %arg5: memref<1x16x64xf32, #tpu.memory_space<vmem>>, %arg6: memref<1x8x64xf32, #tpu.memory_space<vmem>>, %arg7: memref<8x64xf32, #tpu.memory_space<vmem>>, %arg8: memref<8x1xf32, #tpu.memory_space<vmem>>, %arg9: memref<8x1xf32, #tpu.memory_space<vmem>>, %arg10: memref<8x64xf32, #tpu.memory_space<vmem>>) attributes {dimension_semantics = [#tpu.dimension_semantics<parallel>, #tpu.dimension_semantics<parallel>, #tpu.dimension_semantics<arbitrary>], iteration_bounds = array<i64: 2, 1, 1>, scalar_prefetch = 0 : i64, scratch_operands = 4 : i64, tpu.core_type = #tpu.core_type<tc>, window_params = [{pipeline_mode = #tpu.pipeline_mode<synchronous>, transform_indices = @transform_0, window_bounds = array<i64: 4, 64>}, {transform_indices = @transform_1, window_bounds = array<i64: 1, 8, 64>}, {transform_indices = @transform_2, window_bounds = array<i64: 1, 16, 64>}, {transform_indices = @transform_3, window_bounds = array<i64: 1, 8, 64>}]} {
    %c0_i32 = arith.constant 0 : i32
    %0 = arith.cmpi eq, %arg2, %c0_i32 : i32
    %1 = arith.extui %0 : i1 to i32
    %c0_i32_0 = arith.constant 0 : i32
    %2 = arith.cmpi ne, %1, %c0_i32_0 : i32
    scf.if %2 {
      %c0_29 = arith.constant 0 : index
      %c0_30 = arith.constant 0 : index
      %c0_31 = arith.constant 0 : index
      %55 = vector.load %arg4[%c0_29, %c0_30, %c0_31] : memref<1x8x64xf32, #tpu.memory_space<vmem>>, vector<1x8x64xf32>
      %56 = vector.shape_cast %55 : vector<1x8x64xf32> to vector<8x64xf32>
      %c0_32 = arith.constant 0 : index
      %c0_33 = arith.constant 0 : index
      %57 = vector.load %arg3[%c0_32, %c0_33] : memref<4x64xf32, #tpu.memory_space<vmem>>, vector<1x64xf32>
      %c1 = arith.constant 1 : index
      %c0_34 = arith.constant 0 : index
      %58 = vector.load %arg3[%c1, %c0_34] : memref<4x64xf32, #tpu.memory_space<vmem>>, vector<1x64xf32>
      %cst_35 = arith.constant dense<0.000000e+00> : vector<8xf32>
      %59 = vector.multi_reduction <add>, %56, %cst_35 [1] : vector<8x64xf32> to vector<8xf32>
      %60 = vector.shape_cast %59 : vector<8xf32> to vector<8x1xf32>
      %cst_36 = arith.constant 6.400000e+01 : f32
      %61 = vector.broadcast %cst_36 : f32 to vector<8x1xf32>
      %62 = arith.divf %60, %61 : vector<8x1xf32>
      %63 = vector.broadcast %62 : vector<8x1xf32> to vector<8x64xf32>
      %64 = arith.subf %56, %63 : vector<8x64xf32>
      %65 = arith.mulf %64, %64 : vector<8x64xf32>
      %cst_37 = arith.constant dense<0.000000e+00> : vector<8xf32>
      %66 = vector.multi_reduction <add>, %65, %cst_37 [1] : vector<8x64xf32> to vector<8xf32>
      %67 = vector.shape_cast %66 : vector<8xf32> to vector<8x1xf32>
      %cst_38 = arith.constant 6.400000e+01 : f32
      %68 = vector.broadcast %cst_38 : f32 to vector<8x1xf32>
      %69 = arith.divf %67, %68 : vector<8x1xf32>
      %cst_39 = arith.constant 9.99999974E-6 : f32
      %70 = vector.broadcast %cst_39 : f32 to vector<8x1xf32>
      %71 = arith.addf %69, %70 : vector<8x1xf32>
      %72 = math.rsqrt %71 : vector<8x1xf32>
      %73 = vector.broadcast %72 : vector<8x1xf32> to vector<8x64xf32>
      %74 = arith.mulf %64, %73 : vector<8x64xf32>
      %75 = vector.broadcast %57 : vector<1x64xf32> to vector<8x64xf32>
      %76 = arith.mulf %74, %75 : vector<8x64xf32>
      %77 = vector.broadcast %58 : vector<1x64xf32> to vector<8x64xf32>
      %78 = arith.addf %76, %77 : vector<8x64xf32>
      %cst_40 = arith.constant 1.250000e-01 : f32
      %79 = vector.broadcast %cst_40 : f32 to vector<8x64xf32>
      %80 = arith.mulf %78, %79 : vector<8x64xf32>
      %c0_41 = arith.constant 0 : index
      %c0_42 = arith.constant 0 : index
      %81 = vector.load %arg7[%c0_41, %c0_42] : memref<8x64xf32, #tpu.memory_space<vmem>>, vector<8x64xf32>
      tpu.vector_store %arg7[%c0_41, %c0_42], %80 {strides = array<i32>} : memref<8x64xf32, #tpu.memory_space<vmem>>, vector<8x64xf32>,
      %cst_43 = arith.constant 0xFF800000 : f32
      %82 = vector.broadcast %cst_43 : f32 to vector<8x1xf32>
      %c0_44 = arith.constant 0 : index
      %c0_45 = arith.constant 0 : index
      %83 = vector.load %arg8[%c0_44, %c0_45] : memref<8x1xf32, #tpu.memory_space<vmem>>, vector<8x1xf32>
      tpu.vector_store %arg8[%c0_44, %c0_45], %82 {strides = array<i32>} : memref<8x1xf32, #tpu.memory_space<vmem>>, vector<8x1xf32>,
      %cst_46 = arith.constant 0.000000e+00 : f32
      %84 = vector.broadcast %cst_46 : f32 to vector<8x1xf32>
      %c0_47 = arith.constant 0 : index
      %c0_48 = arith.constant 0 : index
      %85 = vector.load %arg9[%c0_47, %c0_48] : memref<8x1xf32, #tpu.memory_space<vmem>>, vector<8x1xf32>
      tpu.vector_store %arg9[%c0_47, %c0_48], %84 {strides = array<i32>} : memref<8x1xf32, #tpu.memory_space<vmem>>, vector<8x1xf32>,
      %cst_49 = arith.constant 0.000000e+00 : f32
      %86 = vector.broadcast %cst_49 : f32 to vector<8x64xf32>
      %c0_50 = arith.constant 0 : index
      %c0_51 = arith.constant 0 : index
      %87 = vector.load %arg10[%c0_50, %c0_51] : memref<8x64xf32, #tpu.memory_space<vmem>>, vector<8x64xf32>
      tpu.vector_store %arg10[%c0_50, %c0_51], %86 {strides = array<i32>} : memref<8x64xf32, #tpu.memory_space<vmem>>, vector<8x64xf32>,
    } else {
    }
    %c0 = arith.constant 0 : index
    %c0_1 = arith.constant 0 : index
    %c0_2 = arith.constant 0 : index
    %3 = vector.load %arg5[%c0, %c0_1, %c0_2] : memref<1x16x64xf32, #tpu.memory_space<vmem>>, vector<1x16x64xf32>
    %4 = vector.shape_cast %3 : vector<1x16x64xf32> to vector<16x64xf32>
    %c2 = arith.constant 2 : index
    %c0_3 = arith.constant 0 : index
    %5 = vector.load %arg3[%c2, %c0_3] : memref<4x64xf32, #tpu.memory_space<vmem>>, vector<1x64xf32>
    %c3 = arith.constant 3 : index
    %c0_4 = arith.constant 0 : index
    %6 = vector.load %arg3[%c3, %c0_4] : memref<4x64xf32, #tpu.memory_space<vmem>>, vector<1x64xf32>
    %cst = arith.constant dense<0.000000e+00> : vector<16xf32>
    %7 = vector.multi_reduction <add>, %4, %cst [1] : vector<16x64xf32> to vector<16xf32>
    %8 = vector.shape_cast %7 : vector<16xf32> to vector<16x1xf32>
    %cst_5 = arith.constant 6.400000e+01 : f32
    %9 = vector.broadcast %cst_5 : f32 to vector<16x1xf32>
    %10 = arith.divf %8, %9 : vector<16x1xf32>
    %11 = vector.broadcast %10 : vector<16x1xf32> to vector<16x64xf32>
    %12 = arith.subf %4, %11 : vector<16x64xf32>
    %13 = arith.mulf %12, %12 : vector<16x64xf32>
    %cst_6 = arith.constant dense<0.000000e+00> : vector<16xf32>
    %14 = vector.multi_reduction <add>, %13, %cst_6 [1] : vector<16x64xf32> to vector<16xf32>
    %15 = vector.shape_cast %14 : vector<16xf32> to vector<16x1xf32>
    %cst_7 = arith.constant 6.400000e+01 : f32
    %16 = vector.broadcast %cst_7 : f32 to vector<16x1xf32>
    %17 = arith.divf %15, %16 : vector<16x1xf32>
    %cst_8 = arith.constant 9.99999974E-6 : f32
    %18 = vector.broadcast %cst_8 : f32 to vector<16x1xf32>
    %19 = arith.addf %17, %18 : vector<16x1xf32>
    %20 = math.rsqrt %19 : vector<16x1xf32>
    %21 = vector.broadcast %20 : vector<16x1xf32> to vector<16x64xf32>
    %22 = arith.mulf %12, %21 : vector<16x64xf32>
    %23 = vector.broadcast %5 : vector<1x64xf32> to vector<16x64xf32>
    %24 = arith.mulf %22, %23 : vector<16x64xf32>
    %25 = vector.broadcast %6 : vector<1x64xf32> to vector<16x64xf32>
    %26 = arith.addf %24, %25 : vector<16x64xf32>
    %c0_9 = arith.constant 0 : index
    %c0_10 = arith.constant 0 : index
    %27 = vector.load %arg7[%c0_9, %c0_10] : memref<8x64xf32, #tpu.memory_space<vmem>>, vector<8x64xf32>
    %28 = tpu.transpose %26, [1, 0] : vector<16x64xf32> -> vector<64x16xf32>
    %cst_11 = arith.constant dense<0.000000e+00> : vector<8x16xf32>
    %29 = tpu.matmul %27, %28, %cst_11 {dimension_numbers = #tpu.dot_dimension_numbers<[1], [0], [0], [1], [0, 0, 1, 1], [], []>} : vector<8x64xf32>, vector<64x16xf32>, vector<8x16xf32> -> vector<8x16xf32>
    %c0_12 = arith.constant 0 : index
    %c0_13 = arith.constant 0 : index
    %30 = vector.load %arg8[%c0_12, %c0_13] : memref<8x1xf32, #tpu.memory_space<vmem>>, vector<8x1xf32>
    %cst_14 = arith.constant dense<0xFF800000> : vector<8xf32>
    %31 = vector.multi_reduction <maximumf>, %29, %cst_14 [1] : vector<8x16xf32> to vector<8xf32>
    %32 = vector.shape_cast %31 : vector<8xf32> to vector<8x1xf32>
    %33 = arith.maximumf %30, %32 : vector<8x1xf32>
    %34 = arith.subf %30, %33 : vector<8x1xf32>
    %35 = math.exp %34 : vector<8x1xf32>
    %36 = vector.broadcast %33 : vector<8x1xf32> to vector<8x16xf32>
    %37 = arith.subf %29, %36 : vector<8x16xf32>
    %38 = math.exp %37 : vector<8x16xf32>
    %c0_15 = arith.constant 0 : index
    %c0_16 = arith.constant 0 : index
    %39 = vector.load %arg9[%c0_15, %c0_16] : memref<8x1xf32, #tpu.memory_space<vmem>>, vector<8x1xf32>
    %40 = arith.mulf %35, %39 : vector<8x1xf32>
    %cst_17 = arith.constant dense<0.000000e+00> : vector<8xf32>
    %41 = vector.multi_reduction <add>, %38, %cst_17 [1] : vector<8x16xf32> to vector<8xf32>
    %42 = vector.shape_cast %41 : vector<8xf32> to vector<8x1xf32>
    %43 = arith.addf %40, %42 : vector<8x1xf32>
    %c0_18 = arith.constant 0 : index
    %c0_19 = arith.constant 0 : index
    %44 = vector.load %arg9[%c0_18, %c0_19] : memref<8x1xf32, #tpu.memory_space<vmem>>, vector<8x1xf32>
    tpu.vector_store %arg9[%c0_18, %c0_19], %43 {strides = array<i32>} : memref<8x1xf32, #tpu.memory_space<vmem>>, vector<8x1xf32>,
    %c0_20 = arith.constant 0 : index
    %c0_21 = arith.constant 0 : index
    %45 = vector.load %arg10[%c0_20, %c0_21] : memref<8x64xf32, #tpu.memory_space<vmem>>, vector<8x64xf32>
    %46 = vector.broadcast %35 : vector<8x1xf32> to vector<8x64xf32>
    %47 = arith.mulf %46, %45 : vector<8x64xf32>
    %cst_22 = arith.constant dense<0.000000e+00> : vector<8x64xf32>
    %48 = tpu.matmul %38, %26, %cst_22 {dimension_numbers = #tpu.dot_dimension_numbers<[1], [0], [0], [1], [0, 0, 1, 1], [], []>} : vector<8x16xf32>, vector<16x64xf32>, vector<8x64xf32> -> vector<8x64xf32>
    %49 = arith.addf %47, %48 : vector<8x64xf32>
    %c0_23 = arith.constant 0 : index
    %c0_24 = arith.constant 0 : index
    %50 = vector.load %arg10[%c0_23, %c0_24] : memref<8x64xf32, #tpu.memory_space<vmem>>, vector<8x64xf32>
    tpu.vector_store %arg10[%c0_23, %c0_24], %49 {strides = array<i32>} : memref<8x64xf32, #tpu.memory_space<vmem>>, vector<8x64xf32>,
    %c0_25 = arith.constant 0 : index
    %c0_26 = arith.constant 0 : index
    %51 = vector.load %arg8[%c0_25, %c0_26] : memref<8x1xf32, #tpu.memory_space<vmem>>, vector<8x1xf32>
    tpu.vector_store %arg8[%c0_25, %c0_26], %33 {strides = array<i32>} : memref<8x1xf32, #tpu.memory_space<vmem>>, vector<8x1xf32>,
    %c0_i32_27 = arith.constant 0 : i32
    %52 = arith.cmpi eq, %arg2, %c0_i32_27 : i32
    %53 = arith.extui %52 : i1 to i32
    %c0_i32_28 = arith.constant 0 : i32
    %54 = arith.cmpi ne, %53, %c0_i32_28 : i32
    scf.if %54 {
      %c0_29 = arith.constant 0 : index
      %c0_30 = arith.constant 0 : index
      %55 = vector.load %arg9[%c0_29, %c0_30] : memref<8x1xf32, #tpu.memory_space<vmem>>, vector<8x1xf32>
      %56 = tpu.reciprocal %55 {approx = true} : vector<8x1xf32> -> vector<8x1xf32>
      %c0_31 = arith.constant 0 : index
      %c0_32 = arith.constant 0 : index
      %57 = vector.load %arg10[%c0_31, %c0_32] : memref<8x64xf32, #tpu.memory_space<vmem>>, vector<8x64xf32>
      %58 = vector.broadcast %56 : vector<8x1xf32> to vector<8x64xf32>
      %59 = arith.mulf %57, %58 : vector<8x64xf32>
      %c0_33 = arith.constant 0 : index
      %c0_34 = arith.constant 0 : index
      %c0_35 = arith.constant 0 : index
      %60 = vector.load %arg6[%c0_33, %c0_34, %c0_35] : memref<1x8x64xf32, #tpu.memory_space<vmem>>, vector<1x8x64xf32>
      %61 = vector.shape_cast %60 : vector<1x8x64xf32> to vector<8x64xf32>
      %62 = vector.shape_cast %59 : vector<8x64xf32> to vector<1x8x64xf32>
      tpu.vector_store %arg6[%c0_33, %c0_34, %c0_35], %62 {strides = array<i32>} : memref<1x8x64xf32, #tpu.memory_space<vmem>>, vector<1x8x64xf32>,
    } else {
    }
    return
  }
  func.func @transform_0(%arg0: i32, %arg1: i32, %arg2: i32) -> (i32, i32) {
    %c0_i32 = arith.constant 0 : i32
    %c0_i32_0 = arith.constant 0 : i32
    %c0_i32_1 = arith.constant 0 : i32
    return %c0_i32, %c0_i32_0 : i32, i32
  }
  func.func @transform_1(%arg0: i32, %arg1: i32, %arg2: i32) -> (i32, i32, i32) {
    %c0_i32 = arith.constant 0 : i32
    %c0_i32_0 = arith.constant 0 : i32
    return %arg0, %arg1, %c0_i32 : i32, i32, i32
  }
  func.func @transform_2(%arg0: i32, %arg1: i32, %arg2: i32) -> (i32, i32, i32) {
    %c0_i32 = arith.constant 0 : i32
    %c0_i32_0 = arith.constant 0 : i32
    return %arg0, %arg2, %c0_i32 : i32, i32, i32
  }
  func.func @transform_3(%arg0: i32, %arg1: i32, %arg2: i32) -> (i32, i32, i32) {
    %c0_i32 = arith.constant 0 : i32
    %c0_i32_0 = arith.constant 0 : i32
    return %arg0, %arg1, %c0_i32 : i32, i32, i32
  }
}

</mosaic_0001>

<bundles_post_ra>
// kernel: tpu_custom_call.1
= control target key start
LH: loop header
LB: loop body
LE: loop exit
PB: predicated region body
PF: predicated region fallthrough
CT: control target
= control target key end

     0   :  { %8 = vsyncpa [#allocation7], 0  ;;  %s1151_s0 = inlined_call_operand.hbm [shape: f32[4,64], index: 0, kind: input, shape index: {}]   ;;  %s1152_s1 = inlined_call_operand.hbm [shape: f32[2,8,64], index: 1, kind: input, shape index: {}]   ;;  %s1153_s2 = inlined_call_operand.hbm [shape: f32[2,16,64], index: 2, kind: input, shape index: {}]   ;;  %s1154_s3 = inlined_call_operand.hbm [shape: f32[2,8,64], index: 3, kind: output, shape index: {}]  }
   0x1   :  { %9 = vsyncpa [#allocation10], 0 }
   0x2   :  { %11 = vsyncpa [#allocation10 + $0x1], 0 }
   0x3   :  { %12 = vsyncpa [#allocation8], 0 }
   0x4   :  { %14 = vsyncpa [#allocation8 + $0x1], 0  ;;  %s950_s12 = smov 0   ;;  %s952_s13 = smov 0  }
   0x5   :  { %s954_s14 = smov 0   ;;  %s956_s15 = smov 0  }
   0x6   :  { %s958_s16 = smov 0   ;;  %s960_s17 = smov 0  }
   0x7 LB: > { %s39_s18 = sadd.s32 1, %s917_s16  ;;  %s69_s19 = sadd.s32 1, %s909_s14  ;;  %s921_s17 = sphi %s960_s17, %s20_s17   ;;  %s917_s16 = sphi %s958_s16, %s1165_s16   ;;  %s913_s15 = sphi %s956_s15, %s1164_s15   ;;  %s909_s14 = sphi %s954_s14, %s1163_s14   ;;  %s905_s13 = sphi %s952_s13, %s1162_s13   ;;  %s901_s12 = sphi %s950_s12, %s1161_s12  }
   0x8   : > { %p41_p0 = scmp.ge.s32.totalorder %s39_s18, 2  ;;  %p76_p1 = scmp.ne.s32.totalorder %s909_s14, %s905_s13 }
   0x9   : > { %p77_p2 = scmp.eq.s32.totalorder %s921_s17, 0  ;;  %p620_p3 = scmp.ge.s32.totalorder %s921_s17, 2 }
   0xa   : > { %s1167_s18 = smov (%p41_p0, %s39_s18), 0  ;;  %p666_p5 = scmp.lt.s32.totalorder %s921_s17, 2 }
   0xb   : > { %p991_p4 = por %p77_p2, %p76_p1  ;;  %s64_s21 = ssub.s32 %s917_s16, %s1167_s18 }
   0xc   : > { %s174_s22 = sand.u32 1, %s921_s17   ;;  %p67_p6 = scmp.eq.s32.totalorder %s64_s21, 0 }
   0xd   : > { %s176_s23 = sand.u32 1, %s909_s14   ;;  %s622_s24 = sshll.u32 %s917_s16, 3 }
   0xe   : > { %s1002_s25 = scalar_select %p67_p6, %s909_s14, %s69_s19  }
   0xf   : > { %s621_s26 = sshll.u32 %s176_s23, 3  ;;  %s183_s29 = scalar_lea.hbm %s1152_s1, %s622_s24 }
  0x10   : > { %s185_s30 = sshll.u32 %s183_s29, 4  ;;  %s178_s4 = scalar_lea.vmem [#allocation9], %s621_s26  ;;  %s186_s30 = int_to_ptr.hbm [resolvable:$true] %s185_s30 }
  0x11   : > { %s187_s5 = sshll.u32 %s178_s4, 4  ;;  %p1011_p7 = pnand %p666_p5, %p991_p4  ;;  %s188_s5 = int_to_ptr.vmem [resolvable:$true] %s187_s5 }
  0x12   : > { %s623_s7 = sshll.u32 %s176_s23, 4  ;;  %s1015_s8 = scalar_lea.sflag [#allocation10], %s174_s22 }
  0x13   : > { %657 = dma.hbm_to_vmem [thread:$0]  (!%p1011_p7), %s186_s30, 128, %s188_s5, %s1015_s8  }
  0x14   : > { %s639_s9 = sshll.u32 %s917_s16, 4  ;;  %s198_s10 = scalar_lea.vmem [#allocation11], %s623_s7 }
  0x15   : > { %s1021_s11 = sshll.u32 %s198_s10, 4  ;;  %s1024_s19 = sadd.s32 4294967295, %s921_s17   ;;  %s209_s11 = int_to_ptr.vmem [resolvable:$true] %s1021_s11 }
  0x16   : > { %s617_s20 = sadd.s32 4294967294, %s921_s17   ;;  %p82_p8 = scmp.ne.s32.totalorder %s905_s13, %s901_s12 }
  0x17   : > { %p83_p9 = scmp.eq.s32.totalorder %s1024_s19, 0  ;;  %p136_p10 = scmp.eq.s32.totalorder %s1024_s19, 1 }
  0x18   : > { %p142_p11 = scmp.eq.s32.totalorder %s617_s20, 1  ;;  %p618_p13 = scmp.ge.s32.totalorder %s921_s17, 1 }
  0x19   : > { %p1033_p12 = por %p83_p9, %p82_p8  ;;  %p1041_p0 = por %p136_p10, %p76_p1 }
  0x1a   : > { %p1045_p2 = por %p142_p11, %p82_p8  ;;  %p149_p4 = scmp.lt.s32.totalorder %s921_s17, 3 }
  0x1b   : > { %s161_s27 = sshll.u32 %s1151_s0, 4  ;;  %s923_s29 = smov [#allocation6]   ;;  %s162_s27 = int_to_ptr.hbm [resolvable:$true] %s161_s27 }
  0x1c   : > { %p1054_p5 = pnand %p618_p13, %p149_p4  ;;  %s163_s30 = sshll.u32 %s923_s29, 4  ;;  %s164_s30 = int_to_ptr.vmem [resolvable:$true] %s163_s30 }
  0x1d   : > { %s205_s7 = scalar_lea.hbm %s1153_s2, %s639_s9  ;;  %s924_s20 = smov 128  }
  0x1e   : > { %p650_p1 = pneg %p1054_p5  ;;  %s206_s10 = sshll.u32 %s205_s7, 4  ;;  %s207_s10 = int_to_ptr.hbm [resolvable:$true] %s206_s10 }
  0x1f   : > { %s925_s24 = smov 8   ;;  %220 = sbr.rel (%p1054_p5) target bundleno = 930 (0x3a2), region = 32 }
  0x20   : > { %p651_p6 = pnand %p650_p1, %p83_p9 }
  0x21   : > { %660 = dma.hbm_to_vmem [thread:$0]  (!%p1011_p7), %s207_s10, 256, %s209_s11, %s1015_s8, %s924_s20, %s924_s20, %s925_s24  }
  0x22   : > { %653 = dma.hbm_to_vmem [thread:$0]  (!%p651_p6), %s162_s27, 64, %s164_s30, [#allocation7]  }
  0x24   : > { %888 = dma.done.wait (%p83_p9), [#allocation7], 64  }
  0x25   : > { %890 = vsyncadd (%p83_p9), [#allocation7], 4294967232  ;;  %s227_s9 = sand.u32 1, %s1024_s19   ;;  %s1076_s26 = sand.u32 1, %s905_s13  }
  0x26   : > { %s628_s27 = sshll.u32 %s1076_s26, 3  ;;  %s228_s6 = scalar_lea.sflag [#allocation10], %s227_s9 }
  0x27   : > { %s231_s8 = scalar_lea.vmem [#allocation9], %s628_s27 }
  0x28   : > { %892 = dma.done.wait (%p1033_p12), %s228_s6, 384  }
  0x29   : > { %894 = vsyncadd (%p1033_p12), %s228_s6, 4294966912  ;;  %s629_s11 = sshll.u32 %s1076_s26, 4  ;;  %vm278_vm0 = vcmask 523264   ;;  %v275_v0 = vld [vmem:[%s231_s8] sm:$0xff]  ;;  %v926_v6 = vmov 64.0   ;;  %vm314_vm11 = vcmask 7168  }
  0x2a   : > { %s241_s28 = scalar_lea.vmem [#allocation11], %s629_s11  ;;  %v279_v2 = vsel %vm278_vm0, %v275_v0, 0.0  ;;  %731 = vrcp.f32 %v926_v6  ;;  %v727_v45 = vld [vmem:[#allocation6] ss:$0 sm:$0xff]  ;;  %v728_v48 = vld [vmem:[#allocation6 + $0x1] ss:$0 sm:$0xff] }
  0x2b   : > { %v318_v1 = vld [vmem:[%s241_s28] sm:$0xff]  ;;  %280 = vadd.xlane.f32.xlu0 %v279_v2  ;;  %v319_v4 = vld [vmem:[%s241_s28 + $0x8] sm:$0xff]  ;;  %vm411_vm12 = vcmask 130048   ;;  %s636_s19 = sshll.u32 %s913_s15, 3  ;;  %s269_s4 = scalar_lea.vmem [#allocation12], %s628_s27 }
  0x2c   : > { %v323_v3 = vsel %vm278_vm0, %v318_v1, 0.0  ;;  %v326_v5 = vsel %vm278_vm0, %v319_v4, 0.0  ;;  %v729_v58 = vld [vmem:[#allocation6 + $0x2] ss:$0 sm:$0xff]  ;;  %v730_v62 = vld [vmem:[#allocation6 + $0x3] ss:$0 sm:$0xff]  ;;  %s493_s30 = scalar_lea.hbm %s1154_s3, %s636_s19 }
  0x2d   : > { %324 = vadd.xlane.f32.xlu1 %v323_v3  ;;  %s495_s5 = sshll.u32 %s269_s4, 4  ;;  %s497_s7 = sshll.u32 %s493_s30, 4  ;;  %s496_s5 = int_to_ptr.vmem [resolvable:$true] %s495_s5  ;;  %s498_s7 = int_to_ptr.hbm [resolvable:$true] %s497_s7 }
  0x2e   : > { %s482_s10 = scalar_lea.sflag [#allocation8], %s1076_s26  ;;  %s849_s20 = sshra.s32 %s498_s7, 4  ;;  %s850_s20 = int_to_ptr.hbm [resolvable:$true] %s849_s20 }
  0x2f   : > { %s851_s15 = scalar_lea.hbm %s850_s20, 8  ;;  %s855_s27 = scalar_lea.hbm %s1154_s3, 16 }
  0x30   : > { %v732_v7 = vpop.eup %731  ;;  %p852_p7 = scmp.ne.s32.totalorder %s850_s20, %s851_s15  ;;  %p856_p10 = scmp.lt.s32.totalorder %s850_s20, %s1154_s3 }
  0x31   : > { %v283_v8 = vmul.f32 64.0, %v732_v7  ;;  %vm287_vm1 = vweird.f32 %v732_v7  ;;  %p857_p11 = scmp.lt.s32.totalorder %s855_s27, %s851_s15 }
  0x32   : > { %p853_p8 = pnand %p852_p7, %p1041_p0 }
  0x33   : > { %327 = vadd.xlane.f32.xlu0 %v326_v5  ;;  %v284_v9 = vsub.f32 1.0, %v283_v8  ;;  %p858_p12 = por %p857_p11, %p856_p10 }
  0x34   : > { %p854_p9 = pneg %p853_p8 }
  0x35   : > { %v285_v10 = vmul.f32 %v732_v7, %v284_v9  ;;  %v927_v9 = vmov -inf  }
  0x36   : > { %315 = vst.msk [vmem:[#allocation3] sm:$0xff] %vm314_vm11, %v927_v9  ;;  %p859_p13 = pnand %p858_p12, %p854_p9 }
  0x37   : > { %v286_v11 = vadd.f32 %v732_v7, %v285_v10 }
  0x39   : > { %v288_v12 = vsel %vm287_vm1, %v732_v7, %v286_v11 }
  0x9e   : > { %v281_v13 = vpop.xlane.xlu0 %280 }
  0x9f   : > { %v289_v14 = vmul.f32 %v288_v12, %v281_v13  ;;  %v929_v13 = vmov 0.0  }
  0xa0   : > { %v325_v17 = vpop.xlane.xlu1 %324  ;;  %317 = vst.msk [vmem:[#allocation5] sm:$0xff] %vm278_vm0, %v929_v13 }
  0xa1   : > { %v290_v15 = vsub.f32 %v275_v0, %v289_v14  ;;  %v336_v21 = vmul.f32 %v325_v17, %v288_v12  ;;  %316 = vst.msk [vmem:[#allocation4] sm:$0xff] %vm314_vm11, %v929_v13  ;;  %v410_v14 = vld [vmem:[#allocation3] sm:$0xff] }
  0xa3   : > { %v291_v16 = vmul.f32 %v290_v15, %v290_v15  ;;  %v1090_v23 = vsub.f32 %v318_v1, %v336_v21 }
  0xa5   : > { %v292_v18 = vsel %vm278_vm0, %v291_v16, 0.0  ;;  %v340_v26 = vmul.f32 %v1090_v23, %v1090_v23 }
  0xa6   : > { %293 = vadd.xlane.f32.xlu1 %v292_v18  ;;  %v328_v19 = vpop.xlane.xlu0 %327 }
  0xa7   : > { %v337_v20 = vmul.f32 %v328_v19, %v288_v12  ;;  %v342_v27 = vsel %vm278_vm0, %v340_v26, 0.0 }
  0xa9   : > { %v339_v22 = vsub.f32 %v319_v4, %v337_v20 }
  0xab   : > { %v341_v24 = vmul.f32 %v339_v22, %v339_v22 }
  0xad   : > { %v345_v25 = vsel %vm278_vm0, %v341_v24, 0.0 }
  0xae   : > { %346 = vadd.xlane.f32.xlu2 %v345_v25  ;;  %v427_v25 = vld [vmem:[#allocation4] sm:$0xff] }
  0xb6   : > { %343 = vadd.xlane.f32.xlu2 %v342_v27 }
 0x119   : > { %v294_v28 = vpop.xlane.xlu1 %293 }
 0x11a   : > { %v295_v29 = vmul.f32 %v294_v28, %v288_v12 }
 0x11c   : > { %v296_v30 = vadd.f32 1e-05, %v295_v29  ;;  %v435_v29 = vld [vmem:[#allocation5] sm:$0xff] }
 0x11e   : > { %733 = vrsqrt.f32 %v296_v30  ;;  %vm303_vm3 = vweird.f32 %v296_v30 }
 0x121   : > { %v347_v31 = vpop.xlane.xlu2 %346 }
 0x122   : > { %v349_v32 = vmul.f32 %v347_v31, %v288_v12 }
 0x124   : > { %v734_v33 = vpop.eup %733  ;;  %v351_v34 = vadd.f32 1e-05, %v349_v32 }
 0x125   : > { %v298_v35 = vmul.f32 %v734_v33, %v296_v30  ;;  %vm304_vm2 = vweird.f32 %v734_v33 }
 0x126   : > { %735 = vrsqrt.f32 %v351_v34  ;;  %vm305_vm4 = vmor %vm303_vm3, %vm304_vm2  ;;  %vm368_vm6 = vweird.f32 %v351_v34 }
 0x127   : > { %v299_v36 = vmul.f32 %v734_v33, %v298_v35 }
 0x129   : > { %v300_v37 = vmul.f32 0.5, %v299_v36  ;;  %v344_v38 = vpop.xlane.xlu2 %343 }
 0x12a   : > { %v348_v39 = vmul.f32 %v344_v38, %v288_v12  ;;  %v928_v12 = vmov 0  }
 0x12b   : > { %v301_v40 = vsub.f32 1.5, %v300_v37  ;;  %724 = vset.pattern.permute.xlu1 %v928_v12  ;;  %725 = vset.pattern.permute.xlu0 %v928_v12 }
 0x12c   : > { %v736_v41 = vpop.eup %735  ;;  %v350_v42 = vadd.f32 1e-05, %v348_v39  ;;  %726 = vset.pattern.permute.xlu2 %v928_v12 }
 0x12d   : > { %v302_v43 = vmul.f32 %v734_v33, %v301_v40  ;;  %v363_v44 = vmul.f32 %v736_v41, %v351_v34  ;;  %vm369_vm5 = vweird.f32 %v736_v41 }
 0x12e   : > { %737 = vrsqrt.f32 %v350_v42  ;;  %vm370_vm7 = vmor %vm368_vm6, %vm369_vm5  ;;  %vm358_vm9 = vweird.f32 %v350_v42 }
 0x12f   : > { %v306_v46 = vsel %vm305_vm4, %v734_v33, %v302_v43  ;;  %v364_v47 = vmul.f32 %v736_v41, %v363_v44 }
 0x130   : > { %v307_v49 = vmul.f32 %v306_v46, %v290_v15 }
 0x131   : > { %v365_v50 = vmul.f32 0.5, %v364_v47 }
 0x132   : > { %v309_v51 = vmul.f32 %v727_v45, %v307_v49 }
 0x133   : > { %v366_v52 = vsub.f32 1.5, %v365_v50 }
 0x134   : > { %v738_v53 = vpop.eup %737  ;;  %v311_v54 = vadd.f32 %v728_v48, %v309_v51 }
 0x135   : > { %v367_v55 = vmul.f32 %v736_v41, %v366_v52  ;;  %v353_v56 = vmul.f32 %v738_v53, %v350_v42  ;;  %vm359_vm8 = vweird.f32 %v738_v53 }
 0x136   : > { %v312_v57 = vmul.f32 0.125, %v311_v54  ;;  %vm360_vm10 = vmor %vm358_vm9, %vm359_vm8 }
 0x137   : > { %v354_v59 = vmul.f32 %v738_v53, %v353_v56  ;;  %v371_v60 = vsel %vm370_vm7, %v736_v41, %v367_v55 }
 0x138   : > { %313 = vst.msk [vmem:[#allocation2] sm:$0xff] %vm278_vm0, %v312_v57  ;;  %v373_v61 = vmul.f32 %v371_v60, %v339_v22 }
 0x139   : > { %v355_v63 = vmul.f32 0.5, %v354_v59 }
 0x13a   : > { %v376_v0 = vmul.f32 %v729_v58, %v373_v61 }
 0x13b   : > { %v356_v1 = vsub.f32 1.5, %v355_v63 }
 0x13c   : > { %v379_v2 = vadd.f32 %v730_v62, %v376_v0 }
 0x13d   : > { %v357_v3 = vmul.f32 %v738_v53, %v356_v1 }
 0x13e   : > { %631 = vmatpush.xpose.msk.msra.mxu0 %vm278_vm0, %v379_v2  ;;  %459 = vmatpush.msra.mxu1 %v379_v2 }
 0x13f   : > { %v361_v4 = vsel %vm360_vm10, %v738_v53, %v357_v3  ;;  %v380_v8 = vld [vmem:[#allocation2] sm:$0xff] }
 0x140   : > { %v372_v5 = vmul.f32 %v361_v4, %v1090_v23 }
 0x142   : > { %v375_v6 = vmul.f32 %v729_v58, %v372_v5 }
 0x144   : > { %v378_v7 = vadd.f32 %v730_v62, %v375_v6 }
 0x146   : > { %632 = vmatpush.xpose.msk.msra.mxu0 %vm278_vm0, %v378_v7  ;;  %460 = vmatpush.msra.mxu1 %v378_v7 }
 0x149   : > { %633 = vmatmul.msk.f32.vlgmr.msra.gmra.mxu0 %vm278_vm0, %v380_v8 }
 0x1c6   : > { %v407_v10 = vpop.f32.mrf.mxu0 }
 0x1c7   : > { %v412_v11 = vsel %vm411_vm12, %v407_v10, -inf }
 0x1c8   : > { %413 = vmax.xlane.f32.xlu0 %v412_v11 }
 0x23b   : > { %v414_v15 = vpop.xlane.xlu0 %413 }
 0x23c   : > { %v415_v16 = vmax.f32 %v410_v14, %v414_v15 }
 0x23e   : > { %v416_v17 = vsub.f32 %v410_v14, %v415_v16  ;;  %467 = vst.msk [vmem:[#allocation3] sm:$0xff] %vm314_vm11, %v415_v16  ;;  %421 = vperm.xlu1 %724, %v415_v16  }
 0x240   : > { %v417_v18 = vmul.f32 1.442695, %v416_v17 }
 0x242   : > { %739 = vpow2.f32 %v417_v18 }
 0x248   : > { %v740_v19 = vpop.eup %739 }
 0x249   : > { %438 = vperm.xlu0 %725, %v740_v19   ;;  %v428_v26 = vmul.f32 %v740_v19, %v427_v25 }
 0x2b0   : > { %v422_v20 = vpop.permute.xlu1 %421 }
 0x2b1   : > { %v424_v21 = vsub.f32 %v407_v10, %v422_v20 }
 0x2b3   : > { %v425_v22 = vmul.f32 1.442695, %v424_v21 }
 0x2b5   : > { %741 = vpow2.f32 %v425_v22 }
 0x2bb   : > { %v742_v23 = vpop.eup %741  ;;  %v439_v30 = vpop.permute.xlu0 %438 }
 0x2bc   : > { %634 = vmatmul.msk.f32.vlgmr.msra.gmra.mxu1 %vm411_vm12, %v742_v23  ;;  %v429_v24 = vsel %vm411_vm12, %v742_v23, 0.0  ;;  %v441_v31 = vmul.f32 %v439_v30, %v435_v29 }
 0x2bd   : > { %430 = vadd.xlane.f32.xlu2 %v429_v24 }
 0x330   : > { %v431_v27 = vpop.xlane.xlu2 %430 }
 0x331   : > { %v432_v28 = vadd.f32 %v431_v27, %v428_v26 }
 0x333   : > { %434 = vst.msk [vmem:[#allocation4] sm:$0xff] %vm314_vm11, %v432_v28 }
 0x339   : > { %v462_v32 = vpop.f32.mrf.mxu1 }
 0x33a   : > { %v465_v33 = vadd.f32 %v462_v32, %v441_v31  ;;  %v471_v34 = vld [vmem:[#allocation4] sm:$0xff] }
 0x33b   : > { %743 = vrcp.f32 %v471_v34 }
 0x33c   : > { %466 = vst.msk [vmem:[#allocation5] sm:$0xff] %vm278_vm0, %v465_v33 }
 0x341   : > { %v744_v35 = vpop.eup %743 }
 0x342   : > { %476 = vperm.xlu2 %726, %v744_v35  }
 0x343   : > { %v473_v36 = vld [vmem:[#allocation5] sm:$0xff] }
 0x39c   : > { %v477_v37 = vpop.permute.xlu2 %476 }
 0x39d   : > { %v479_v38 = vmul.f32 %v477_v37, %v473_v36 }
 0x39f   : > { %480 = vst.msk [vmem:[%s269_s4] sm:$0xff] %vm278_vm0, %v479_v38 }
 0x3a0   : > { %862 = shalt.err (!%p859_p13)
}
 0x3a1   : > { %648 = dma.vmem_to_hbm [thread:$0]  (%p1041_p0), %s496_s5, 128, %s498_s7, %s482_s10  }
 0x3a2 PF: > { %s509_s26 = sand.u32 1, %s901_s12   ;;  %p662_p4 = pnand %p620_p3, %p1045_p2 }
 0x3a3   : > { %s510_s11 = scalar_lea.sflag [#allocation8], %s509_s26 }
 0x3a4   : > { %p663_p5 = pneg %p662_p4 }
 0x3a6   : > { %896 = dma.done.wait (%p663_p5), %s510_s11, 128  }
 0x3a7   : > { %898 = vsyncadd (%p663_p5), %s510_s11, 4294967168  ;;  %s20_s17 = sadd.s32 1, %s921_s17   ;;  %s1161_s12 = smov %s905_s13 }
 0x3a8   : > { %p17_p1 = scmp.ge.s32.totalorder %s20_s17, 4   ;;  %s1162_s13 = smov %s909_s14 }
 0x3a9   : > { %s1163_s14 = smov %s1002_s25  ;;  %s1164_s15 = smov %s917_s16 }
 0x3aa   : > { %s1165_s16 = smov %s1167_s18  ;;  %19 = sbr.rel (!%p17_p1) target bundleno = 7 (0x7), region = 101 }
 0x3af   :  { %516 = vsyncpa [#allocation7], 1 }
 0x3b0   :  { %518 = vsyncpa [#allocation7 + $0x1], 1 }
 0x3b1   :  { %519 = vsyncpa [#allocation10], 1 }
 0x3b2   :  { %521 = vsyncpa [#allocation10 + $0x1], 1 }
 0x3b3   :  { %522 = vsyncpa [#allocation8], 1 }
 0x3b4   :  { %524 = vsyncpa [#allocation8 + $0x1], 1 }

</bundles_post_ra>
